<compile_context>
chip_gen: v7x
topology: tpu7x:2x2x1
jax: 0.10.0
libtpu: 0.0.40
codegen_flags: <defaults>
</compile_context>

<pallas_src>
import jax
import jax.numpy as jnp
from jax.experimental import pallas as pl
from jax.experimental.pallas import tpu as pltpu


def _ps_conv1x1_kernel(x_ref, w_ref, b_ref, o_ref):
    # x_ref: (C, S)      activation columns (S = lane-dense spatial tile)
    # w_ref: (Cout, C)   1x1 conv weight
    # b_ref: (Cout, 1)   conv bias (broadcast over lanes)
    # o_ref: (Cout, S)   NCHW conv output tile (lane-dense)
    y = jnp.dot(w_ref[...], x_ref[...], preferred_element_type=jnp.float32)
    o_ref[...] = (y + b_ref[...]).astype(o_ref.dtype)


def ps_upsampling_forward(x_nchw, conv_weight, conv_bias, *, scale_factor=2,
                          max_tile=2048, input_dtype=None):
    """PSUpsampling forward.

    x_nchw:      (N, C, H, W)
    conv_weight: (C*r*r, C, 1, 1)
    conv_bias:   (C*r*r,)
    Returns:     (N, C, H*r, W*r), matching Conv2d(1x1) + PixelShuffle(r).
    """
    N, C, H, W = x_nchw.shape
    r = scale_factor
    Cout = conv_weight.shape[0]
    assert Cout == C * r * r, "conv_weight must expand channels by r**2"
    HW = H * W
    out_dtype = x_nchw.dtype

    # ---- zero-cost views (no data movement) ----
    x3d = x_nchw.reshape(N, C, HW)                 # contiguous NCHW view
    w2d = conv_weight.reshape(Cout, C)
    b2d = conv_bias.reshape(Cout, 1).astype(jnp.float32)

    # optional bf16 feed for v6e/v7x bandwidth (accumulation stays f32)
    if input_dtype is not None:
        x3d = x3d.astype(input_dtype)
        w2d = w2d.astype(input_dtype)

    # ---- lane tile: as big as possible, multiple of 128 (or full extent) ----
    if HW <= max_tile:
        tile_s = HW                                # full dim -> always legal
    else:
        tile_s = max(128, (max_tile // 128) * 128)
    grid_s = pl.cdiv(HW, tile_s)                   # padded edge block is fine

    elt = jnp.dtype(x3d.dtype).itemsize
    cost = pl.CostEstimate(
        flops=2 * N * HW * C * Cout,
        transcendentals=0,
        bytes_accessed=(N * C * HW * elt + Cout * C * elt
                        + N * Cout * HW * jnp.dtype(out_dtype).itemsize),
    )

    y3d = pl.pallas_call(
        _ps_conv1x1_kernel,
        out_shape=jax.ShapeDtypeStruct((N, Cout, HW), out_dtype),
        grid_spec=pltpu.PrefetchScalarGridSpec(
            num_scalar_prefetch=0,
            grid=(N, grid_s),
            in_specs=[
                pl.BlockSpec((None, C, tile_s), lambda n, s: (n, 0, s)),
                pl.BlockSpec((Cout, C), lambda n, s: (0, 0)),
                pl.BlockSpec((Cout, 1), lambda n, s: (0, 0)),
            ],
            out_specs=pl.BlockSpec((None, Cout, tile_s), lambda n, s: (n, 0, s)),
        ),
        compiler_params=pltpu.CompilerParams(
            dimension_semantics=("parallel", "parallel")),
        cost_estimate=cost,
    )(x3d, w2d, b2d)                               # (N, Cout, HW) == NCHW conv out

    # ---- PixelShuffle: (N, C*r*r, H, W) -> (N, C, H*r, W*r) ----
    # out[n, c, h*r+i, w*r+j] = conv[n, c*r*r + i*r + j, h, w]
    # TODO(synk): fuse this channel->space scatter into the kernel's output
    # BlockSpec once the in-kernel (C,r,r,th,W)->(C,th,r,W,r) relayout is
    # cheaper than this single XLA pass.
    y = y3d.reshape(N, C, r, r, H, W)
    y = jnp.transpose(y, (0, 1, 4, 2, 5, 3))       # (N, C, H, r, W, r)
    return y.reshape(N, C, H * r, W * r)


if __name__ == "__main__":
    # Small shapes: batch=2, channel=4, spatial=16, scale_factor=2
    N, C, H, W = 2, 4, 16, 16
    r = 2
    Cout = C * r * r

    key = jax.random.PRNGKey(0)
    kx, kw, kb = jax.random.split(key, 3)

    x = jax.random.normal(kx, (N, C, H, W), dtype=jnp.float32)

    # nn.Conv2d default init: U(-1/sqrt(fan_in), 1/sqrt(fan_in)), fan_in = C*1*1
    bound = 1.0 / (C ** 0.5)
    conv_w = jax.random.uniform(kw, (Cout, C, 1, 1), jnp.float32, -bound, bound)
    conv_b = jax.random.uniform(kb, (Cout,), jnp.float32, -bound, bound)

    fwd = jax.jit(lambda xx, ww, bb: ps_upsampling_forward(
        xx, ww, bb, scale_factor=r))
    out = jax.block_until_ready(fwd(x, conv_w, conv_b))

    # pure-JAX reference of the same math
    y_ref = jnp.einsum('nchw,oc->nohw', x, conv_w.reshape(Cout, C)) \
            + conv_b[None, :, None, None]
    y_ref = y_ref.reshape(N, C, r, r, H, W)
    y_ref = jnp.transpose(y_ref, (0, 1, 4, 2, 5, 3)).reshape(N, C, H * r, W * r)

    assert out.shape == (N, C, H * r, W * r)
    assert jnp.allclose(out, y_ref, atol=1e-4, rtol=1e-4)
    print("KERNEL_OK")
</pallas_src>

<mosaic_0001>
module attributes {stable_mosaic.version = 11 : i64} {
  func.func @_ps_conv1x1_kernel(%arg0: i32, %arg1: i32, %arg2: memref<1x4x256xf32, #tpu.memory_space<vmem>>, %arg3: memref<16x4xf32, #tpu.memory_space<vmem>>, %arg4: memref<16x1xf32, #tpu.memory_space<vmem>>, %arg5: memref<1x16x256xf32, #tpu.memory_space<vmem>>) attributes {dimension_semantics = [#tpu.dimension_semantics<parallel>, #tpu.dimension_semantics<parallel>], iteration_bounds = array<i64: 2, 1>, scalar_prefetch = 0 : i64, scratch_operands = 0 : i64, tpu.core_type = #tpu.core_type<tc>, window_params = [{transform_indices = @transform_0, window_bounds = array<i64: 1, 4, 256>}, {pipeline_mode = #tpu.pipeline_mode<synchronous>, transform_indices = @transform_1, window_bounds = array<i64: 16, 4>}, {pipeline_mode = #tpu.pipeline_mode<synchronous>, transform_indices = @transform_2, window_bounds = array<i64: 16, 1>}, {transform_indices = @transform_3, window_bounds = array<i64: 1, 16, 256>}]} {
    %c0 = arith.constant 0 : index
    %c0_0 = arith.constant 0 : index
    %0 = vector.load %arg3[%c0, %c0_0] : memref<16x4xf32, #tpu.memory_space<vmem>>, vector<16x4xf32>
    %c0_1 = arith.constant 0 : index
    %c0_2 = arith.constant 0 : index
    %c0_3 = arith.constant 0 : index
    %1 = vector.load %arg2[%c0_1, %c0_2, %c0_3] : memref<1x4x256xf32, #tpu.memory_space<vmem>>, vector<1x4x256xf32>
    %2 = vector.shape_cast %1 : vector<1x4x256xf32> to vector<4x256xf32>
    %cst = arith.constant dense<0.000000e+00> : vector<16x256xf32>
    %3 = tpu.matmul %0, %2, %cst {dimension_numbers = #tpu.dot_dimension_numbers<[1], [0], [0], [1], [0, 0, 1, 1], [], []>} : vector<16x4xf32>, vector<4x256xf32>, vector<16x256xf32> -> vector<16x256xf32>
    %c0_4 = arith.constant 0 : index
    %c0_5 = arith.constant 0 : index
    %4 = vector.load %arg4[%c0_4, %c0_5] : memref<16x1xf32, #tpu.memory_space<vmem>>, vector<16x1xf32>
    %5 = vector.broadcast %4 : vector<16x1xf32> to vector<16x256xf32>
    %6 = arith.addf %3, %5 : vector<16x256xf32>
    %c0_6 = arith.constant 0 : index
    %c0_7 = arith.constant 0 : index
    %c0_8 = arith.constant 0 : index
    %7 = vector.load %arg5[%c0_6, %c0_7, %c0_8] : memref<1x16x256xf32, #tpu.memory_space<vmem>>, vector<1x16x256xf32>
    %8 = vector.shape_cast %7 : vector<1x16x256xf32> to vector<16x256xf32>
    %9 = vector.shape_cast %6 : vector<16x256xf32> to vector<1x16x256xf32>
    tpu.vector_store %arg5[%c0_6, %c0_7, %c0_8], %9 {strides = array<i32>} : memref<1x16x256xf32, #tpu.memory_space<vmem>>, vector<1x16x256xf32>,
    return
  }
  func.func @transform_0(%arg0: i32, %arg1: i32) -> (i32, i32, i32) {
    %c0_i32 = arith.constant 0 : i32
    %c0_i32_0 = arith.constant 0 : i32
    return %arg0, %c0_i32, %arg1 : i32, i32, i32
  }
  func.func @transform_1(%arg0: i32, %arg1: i32) -> (i32, i32) {
    %c0_i32 = arith.constant 0 : i32
    %c0_i32_0 = arith.constant 0 : i32
    %c0_i32_1 = arith.constant 0 : i32
    return %c0_i32, %c0_i32_0 : i32, i32
  }
  func.func @transform_2(%arg0: i32, %arg1: i32) -> (i32, i32) {
    %c0_i32 = arith.constant 0 : i32
    %c0_i32_0 = arith.constant 0 : i32
    %c0_i32_1 = arith.constant 0 : i32
    return %c0_i32, %c0_i32_0 : i32, i32
  }
  func.func @transform_3(%arg0: i32, %arg1: i32) -> (i32, i32, i32) {
    %c0_i32 = arith.constant 0 : i32
    %c0_i32_0 = arith.constant 0 : i32
    return %arg0, %c0_i32, %arg1 : i32, i32, i32
  }
}

</mosaic_0001>

<bundles_post_ra>
// kernel: _lambda_.1
= control target key start
LH: loop header
LB: loop body
LE: loop exit
PB: predicated region body
PF: predicated region fallthrough
CT: control target
= control target key end

     0   :  { %s500_s12 = smov 0   ;;  %s502_s13 = smov 0   ;;  %s545_s0 = inlined_call_operand.vmem [shape: f32[2,4,256], index: 0, kind: input, shape index: {}]   ;;  %s546_s1 = inlined_call_operand.vmem [shape: f32[16,4], index: 1, kind: input, shape index: {}]   ;;  %s547_s2 = inlined_call_operand.vmem [shape: f32[16,1], index: 2, kind: input, shape index: {}]   ;;  %s548_s3 = inlined_call_operand.vmem [shape: f32[2,16,256], index: 3, kind: output, shape index: {}]  }
   0x1   :  { %s504_s14 = smov 0  }
   0x2 LB: > { %s25_s15 = sadd.s32 1, %s472_s13  ;;  %p411_p0 = scmp.ge.s32.totalorder %s476_s14, 1  ;;  %s476_s14 = sphi %s504_s14, %s13_s14   ;;  %s472_s13 = sphi %s502_s13, %s550_s13   ;;  %s468_s12 = sphi %s500_s12, %s549_s12  }
   0x3   : > { %p27_p1 = scmp.ge.s32.totalorder %s25_s15, 2  ;;  %p158_p2 = scmp.lt.s32.totalorder %s476_s14, 3 }
   0x5   : > { %s552_s15 = smov (%p27_p1, %s25_s15), 0  ;;  %p159_p3 = pnand %p411_p0, %p158_p2 }
   0x6   : > { %p191_p4 = scmp.lt.s32.totalorder (!%p159_p3), %s468_s12, 1  ;;  %v478_v0 = vmov (!%p159_p3), 0.0   ;;  %v213_v1 = vld [vmem:[%s547_s2] sm:$0xff] (!%p159_p3)  ;;  %v479_v2 = vmov (!%p159_p3), 0   ;;  %v214_v3 = vld [vmem:[%s547_s2 + $0x8] sm:$0xff] (!%p159_p3)  ;;  %vm234_vm0 = vcmask (!%p159_p3), 1043456  }
   0x7   : > { %162 = sbr.rel (%p159_p3) target bundleno = 238 (0xee), region = 32  ;;  %303 = vmatprep.mubr.f32.mxu0 (!%p159_p3), %v478_v0  ;;  %309 = vmatprep.mubr.f32.mxu1 (!%p159_p3), %v478_v0  ;;  %v210_v6 = vld [vmem:[%s546_s1] sm:$0xff] (!%p159_p3)  ;;  %vm227_vm1 = vcmask (!%p159_p3), 31744   ;;  %v211_v7 = vld [vmem:[%s546_s1 + $0x8] sm:$0xff] (!%p159_p3) }
   0x8   : > { %452 = vset.pattern.permute.xlu0 (!%p159_p3), %v479_v2 }
   0x9   : > { %217 = vperm.xlu0 (!%p159_p3), %452, %v213_v1  }
   0xd   : > { %222 = vperm.xlu0 (!%p159_p3), %452, %v214_v3  }
   0xe   : > { %s554_s12 = smov (!%p191_p4, %s468_s12), 1 }
   0xf   : > { %s422_s18 = sshll.u32 %s554_s12, 3  ;;  %s423_s28 = sshll.u32 %s554_s12, 5 }
  0x10   : > { %s198_s23 = scalar_lea.vmem %s545_s0, %s422_s18  ;;  %s208_s4 = scalar_lea.vmem %s548_s3, %s423_s28 }
  0x11   : > { %v212_v4 = vld [vmem:[%s198_s23] sm:$0xff] }
  0x12   : > { %v226_v5 = vcombine.high %v212_v4, %v212_v4 }
  0x14   : > { %416 = vmatprep.subr.msk.mxu0 %vm234_vm0, %v226_v5  ;;  %424 = vmatprep.subr.msk.mxu1 %vm234_vm0, %v226_v5 }
  0x15   : > { %417 = vmatpush1.msk.msra.mxu0 %vm234_vm0, %v212_v4  ;;  %425 = vmatpush1.msk.msra.mxu1 %vm234_vm0, %v212_v4 }
  0x16   : > { %418 = vmatmul.mubr.msk.f32.vlgmr.msra.gmra.mrb[0].mxu0 %vm227_vm1, %v210_v6  ;;  %419 = vmatmul.mubr.msk.f32.vlgmr.msra.gmra.mrb[0].mxu1 %vm227_vm1, %v211_v7 }
  0x88   : > { %v218_v8 = vpop.permute.xlu0 %217 }
  0x8c   : > { %v223_v9 = vpop.permute.xlu0 %222 }
  0xe9   : > { %v305_v10 = vpop.f32.mrb[0].mxu0  ;;  %v311_v11 = vpop.f32.mrb[0].mxu1 }
  0xea   : > { %v306_v12 = vadd.f32 %v305_v10, %v218_v8  ;;  %v312_v13 = vadd.f32 %v311_v11, %v223_v9  ;;  %v307_v14 = vpop.f32.mrb[1].mxu0  ;;  %v313_v15 = vpop.f32.mrb[1].mxu1 }
  0xeb   : > { %v308_v16 = vadd.f32 %v307_v14, %v218_v8  ;;  %v314_v17 = vadd.f32 %v313_v15, %v223_v9 }
  0xec   : > { %316 = vst [vmem:[%s208_s4] sm:$0xff] %v306_v12  ;;  %318 = vst [vmem:[%s208_s4 + $0x10] sm:$0xff] %v312_v13 }
  0xed   : > { %317 = vst [vmem:[%s208_s4 + $0x8] sm:$0xff] %v308_v16  ;;  %319 = vst [vmem:[%s208_s4 + $0x18] sm:$0xff] %v314_v17 }
  0xee PF: > { %s13_s14 = sadd.s32 1, %s476_s14   ;;  %s549_s12 = smov %s472_s13 }
  0xef   : > { %p10_p5 = scmp.ge.s32.totalorder %s13_s14, 4   ;;  %s550_s13 = smov %s552_s15 }
  0xf1   :  { %12 = sbr.rel (!%p10_p5) target bundleno = 2 (0x2), region = 62 }

</bundles_post_ra>
